<compile_context>
chip_gen: v6e
topology: v6e:2x2x1
jax: 0.10.0
libtpu: 0.0.40
codegen_flags: <defaults>
</compile_context>

<pallas_src>
import functools
import math

import jax
import jax.numpy as jnp
from jax.experimental import pallas as pl
from jax.experimental.pallas import tpu as pltpu


# ----------------------------------------------------------------------------
# Kernel helpers
# ----------------------------------------------------------------------------
def _hardswish(y):
    # PyTorch Hardswish: x * relu6(x + 3) / 6
    return y * jnp.clip(y + 3.0, 0.0, 6.0) * (1.0 / 6.0)


# ----------------------------------------------------------------------------
# Fully fused InvertedResidualForDecoder kernel (one image per grid step).
#   block(x) = BN3(pw2( scSE( hsw(BN2(dw3x3( hsw(BN1(pw1(x))) ))) ) ))
#   out      = block(x) + (skip_conv(x) if Cin != Cout else x)
# BN scales are pre-folded into the weights; kernels only add the bias.
# ----------------------------------------------------------------------------
def _ir_kernel(x_ref, pw1_w_ref, bn1_b_ref, dw_w_ref, bn2_b_ref,
               se_w1_ref, se_b1_ref, se_w2_ref, se_b2_ref, se_sw_ref, se_sb_ref,
               pw2_w_ref, bn3_b_ref, *rest, has_skip_conv):
    if has_skip_conv:
        skip_w_ref, skip_b_ref, o_ref, hpad_ref = rest
    else:
        o_ref, hpad_ref = rest

    H, W, Cout = o_ref.shape[1], o_ref.shape[2], o_ref.shape[3]
    Cin = x_ref.shape[3]
    Cmid = pw1_w_ref.shape[1]
    HW = H * W

    # ---- pointwise expand (pw1) + BN1 (scale folded) + hardswish -----------
    x2 = x_ref[0].reshape(HW, Cin)                               # (HW, Cin)
    h = jnp.dot(x2, pw1_w_ref[...], preferred_element_type=jnp.float32)
    h = _hardswish(h + bn1_b_ref[...])                           # (HW, Cmid)

    # ---- depthwise 3x3 (stride 1, pad 1) + BN2 (scale folded) + hardswish --
    # Zero-padded VMEM scratch holds the halo; 9-tap shift/MAC on the value.
    hpad_ref[...] = jnp.zeros_like(hpad_ref)
    hpad_ref[1:H + 1, 1:W + 1, :] = h.reshape(H, W, Cmid)
    hp = hpad_ref[...]                                           # (H+2, W+2, Cmid)
    wv = dw_w_ref[...]                                           # (3, 3, Cmid)
    acc = jnp.zeros((H, W, Cmid), jnp.float32)
    for dh in range(3):
        for dwi in range(3):
            acc = acc + hp[dh:dh + H, dwi:dwi + W, :] * wv[dh, dwi]
    g = _hardswish(acc.reshape(HW, Cmid) + bn2_b_ref[...])       # (HW, Cmid)

    # ---- scSE: x * cSE(x) + x * sSE(x) --------------------------------------
    pooled = jnp.mean(g, axis=0, keepdims=True)                  # (1, Cmid)
    hid = jnp.maximum(
        jnp.dot(pooled, se_w1_ref[...], preferred_element_type=jnp.float32)
        + se_b1_ref[...], 0.0)
    cse = jax.nn.sigmoid(
        jnp.dot(hid, se_w2_ref[...], preferred_element_type=jnp.float32)
        + se_b2_ref[...])                                        # (1, Cmid)
    sse = jax.nn.sigmoid(
        jnp.sum(g * se_sw_ref[...], axis=-1, keepdims=True) + se_sb_ref[...])  # (HW, 1)
    s = g * cse + g * sse                                        # (HW, Cmid)

    # ---- pointwise project (pw2) + BN3 (scale folded) + residual -----------
    y = jnp.dot(s, pw2_w_ref[...], preferred_element_type=jnp.float32) + bn3_b_ref[...]
    if has_skip_conv:
        sk = (jnp.dot(x2, skip_w_ref[...], preferred_element_type=jnp.float32)
              + skip_b_ref[...])
    else:
        sk = x2                                                  # Cin == Cout
    o_ref[0] = (y + sk).reshape(H, W, Cout)


def inverted_residual_forward(p, x):
    """x: (N, H, W, Cin) NHWC float32 -> (N, H, W, Cout)."""
    N, H, W, Cin = x.shape
    Cmid = p["pw1_w"].shape[1]
    Cout = p["pw2_w"].shape[1]
    Cr = p["scse"]["w1"].shape[1]
    has_skip_conv = not p["same_shape"]

    args = [x, p["pw1_w"], p["bn1_bias"], p["dw_w"], p["bn2_bias"],
            p["scse"]["w1"], p["scse"]["b1"], p["scse"]["w2"], p["scse"]["b2"],
            p["scse"]["sw"], p["scse"]["sb"], p["pw2_w"], p["bn3_bias"]]
    in_specs = [
        pl.BlockSpec((1, H, W, Cin), lambda n: (n, 0, 0, 0)),
        pl.BlockSpec((Cin, Cmid), lambda n: (0, 0)),
        pl.BlockSpec((1, Cmid), lambda n: (0, 0)),
        pl.BlockSpec((3, 3, Cmid), lambda n: (0, 0, 0)),
        pl.BlockSpec((1, Cmid), lambda n: (0, 0)),
        pl.BlockSpec((Cmid, Cr), lambda n: (0, 0)),
        pl.BlockSpec((1, Cr), lambda n: (0, 0)),
        pl.BlockSpec((Cr, Cmid), lambda n: (0, 0)),
        pl.BlockSpec((1, Cmid), lambda n: (0, 0)),
        pl.BlockSpec((1, Cmid), lambda n: (0, 0)),
        pl.BlockSpec((1, 1), lambda n: (0, 0)),
        pl.BlockSpec((Cmid, Cout), lambda n: (0, 0)),
        pl.BlockSpec((1, Cout), lambda n: (0, 0)),
    ]
    if has_skip_conv:
        args += [p["skip_w"], p["skip_bias"]]
        in_specs += [
            pl.BlockSpec((Cin, Cout), lambda n: (0, 0)),
            pl.BlockSpec((1, Cout), lambda n: (0, 0)),
        ]

    return pl.pallas_call(
        functools.partial(_ir_kernel, has_skip_conv=has_skip_conv),
        out_shape=jax.ShapeDtypeStruct((N, H, W, Cout), jnp.float32),
        grid=(N,),
        in_specs=in_specs,
        out_specs=pl.BlockSpec((1, H, W, Cout), lambda n: (n, 0, 0, 0)),
        scratch_shapes=[pltpu.VMEM((H + 2, W + 2, Cmid), jnp.float32)],
        compiler_params=pltpu.CompilerParams(dimension_semantics=("parallel",)),
    )(*args)


# ----------------------------------------------------------------------------
# JAX glue: nearest upsample 2x, pad-to-same, concat.
# ----------------------------------------------------------------------------
def upsample_nearest_2x(x):
    N, H, W, C = x.shape
    x = jnp.broadcast_to(x[:, :, None, :, None, :], (N, H, 2, W, 2, C))
    return x.reshape(N, 2 * H, 2 * W, C)


def pad_to_match(x, ref_arr):
    dh = ref_arr.shape[1] - x.shape[1]
    dw = ref_arr.shape[2] - x.shape[2]
    if dh == 0 and dw == 0:
        return x
    return jnp.pad(x, ((0, 0), (dh // 2, dh - dh // 2), (dw // 2, dw - dw // 2), (0, 0)))


# ----------------------------------------------------------------------------
# Parameter construction (deterministic, synthetic).
# BN folded to inference-mode affine; the per-channel scale is folded directly
# into the preceding conv's weights, leaving only a bias for the kernel.
# ----------------------------------------------------------------------------
_BN_EPS = 1e-5


def _bn_fold(kg, kb, ch):
    gamma = 1.0 + 0.05 * jax.random.normal(kg, (1, ch), jnp.float32)
    beta = 0.05 * jax.random.normal(kb, (1, ch), jnp.float32)
    scale = gamma / jnp.sqrt(1.0 + _BN_EPS)   # running_mean=0, running_var=1
    return scale, beta


def _init_ir(key, in_ch, out_ch, expansion_ratio, squeeze_ratio):
    mid = expansion_ratio * in_ch
    cr = max(mid // squeeze_ratio, 1)
    ks = jax.random.split(key, 16)
    p = {"same_shape": in_ch == out_ch}

    pw1 = jax.random.normal(ks[0], (in_ch, mid), jnp.float32) / math.sqrt(in_ch)
    s1, b1 = _bn_fold(ks[1], ks[2], mid)
    p["pw1_w"] = pw1 * s1                      # fold BN1 scale per output column
    p["bn1_bias"] = b1

    dw = jax.random.normal(ks[3], (3, 3, mid), jnp.float32) / 3.0
    s2, b2 = _bn_fold(ks[4], ks[5], mid)
    p["dw_w"] = dw * s2.reshape(1, 1, mid)     # fold BN2 scale per channel
    p["bn2_bias"] = b2

    p["scse"] = {
        "w1": jax.random.normal(ks[6], (mid, cr), jnp.float32) / math.sqrt(mid),
        "b1": 0.05 * jax.random.normal(ks[7], (1, cr), jnp.float32),
        "w2": jax.random.normal(ks[8], (cr, mid), jnp.float32) / math.sqrt(cr),
        "b2": 0.05 * jax.random.normal(ks[9], (1, mid), jnp.float32),
        "sw": jax.random.normal(ks[10], (1, mid), jnp.float32) / math.sqrt(mid),
        "sb": 0.05 * jax.random.normal(ks[11], (1, 1), jnp.float32),
    }

    pw2 = jax.random.normal(ks[12], (mid, out_ch), jnp.float32) / math.sqrt(mid)
    s3, b3 = _bn_fold(ks[13], ks[14], out_ch)
    p["pw2_w"] = pw2 * s3                      # fold BN3 scale
    p["bn3_bias"] = b3

    if not p["same_shape"]:
        kk = jax.random.split(ks[15], 4)
        w = jax.random.normal(kk[0], (in_ch, out_ch), jnp.float32) / math.sqrt(in_ch)
        cb = 0.05 * jax.random.normal(kk[1], (1, out_ch), jnp.float32)
        scale, beta = _bn_fold(kk[2], kk[3], out_ch)
        p["skip_w"] = w * scale                          # fold BN scale
        p["skip_bias"] = cb * scale + beta               # conv bias folded through BN
    return p


def _init_decoder_block(key, in_ch, skip_ch, out_ch, squeeze_ratio, expansion_ratio):
    k1, k2 = jax.random.split(key)
    return {
        "conv1": _init_ir(k1, in_ch + skip_ch, out_ch, expansion_ratio, squeeze_ratio),
        "conv2": _init_ir(k2, out_ch, out_ch, expansion_ratio, squeeze_ratio),
    }


# ----------------------------------------------------------------------------
# Forward passes (NHWC internally).
# ----------------------------------------------------------------------------
def decoder_block_forward(params, x, skip=None):
    x = upsample_nearest_2x(x)
    if skip is not None:
        x = pad_to_match(x, skip)
        x = jnp.concatenate([x, skip], axis=-1)
    x = inverted_residual_forward(params["conv1"], x)
    x = inverted_residual_forward(params["conv2"], x)
    return x


class EfficientUnetPlusPlusDecoderPallas:
    def __init__(self, encoder_channels, decoder_channels, key,
                 n_blocks=None, squeeze_ratio=1, expansion_ratio=1):
        n_blocks = len(decoder_channels) if n_blocks is None else n_blocks
        if n_blocks != len(decoder_channels):
            raise ValueError("n_blocks must equal len(decoder_channels)")
        enc = list(encoder_channels[1:])[::-1]
        head = enc[0]
        self.in_channels = [head] + list(decoder_channels[:-1])
        self.skip_channels = list(enc[1:]) + [0]
        self.out_channels = list(decoder_channels)
        self.depth = len(self.in_channels) - 1

        keys = iter(jax.random.split(key, 64))
        blocks = {}
        for layer_idx in range(len(self.in_channels) - 1):
            for depth_idx in range(layer_idx + 1):
                if depth_idx == 0:
                    in_ch = self.in_channels[layer_idx]
                    skip_ch = self.skip_channels[layer_idx] * (layer_idx + 1)
                    out_ch = self.out_channels[layer_idx]
                else:
                    out_ch = self.skip_channels[layer_idx]
                    skip_ch = self.skip_channels[layer_idx] * (layer_idx + 1 - depth_idx)
                    in_ch = self.skip_channels[layer_idx - 1]
                blocks[f"x_{depth_idx}_{layer_idx}"] = _init_decoder_block(
                    next(keys), in_ch, skip_ch, out_ch, squeeze_ratio, expansion_ratio)
        blocks[f"x_0_{len(self.in_channels) - 1}"] = _init_decoder_block(
            next(keys), self.in_channels[-1], 0, self.out_channels[-1],
            squeeze_ratio, expansion_ratio)
        self.blocks = blocks

    def __call__(self, *features):
        # features are NCHW (PyTorch convention); drop first, reverse, go NHWC.
        features = features[1:][::-1]
        feats = [jnp.transpose(f, (0, 2, 3, 1)).astype(jnp.float32) for f in features]

        dense_x = {}
        for layer_idx in range(len(self.in_channels) - 1):
            for depth_idx in range(self.depth - layer_idx):
                if layer_idx == 0:
                    out = decoder_block_forward(
                        self.blocks[f"x_{depth_idx}_{depth_idx}"],
                        feats[depth_idx], feats[depth_idx + 1])
                    dense_x[f"x_{depth_idx}_{depth_idx}"] = out
                else:
                    dense_l_i = depth_idx + layer_idx
                    cat_features = [dense_x[f"x_{idx}_{dense_l_i}"]
                                    for idx in range(depth_idx + 1, dense_l_i + 1)]
                    cat = jnp.concatenate(cat_features + [feats[dense_l_i + 1]], axis=-1)
                    dense_x[f"x_{depth_idx}_{dense_l_i}"] = decoder_block_forward(
                        self.blocks[f"x_{depth_idx}_{dense_l_i}"],
                        dense_x[f"x_{depth_idx}_{dense_l_i - 1}"], cat)
        dense_x[f"x_0_{self.depth}"] = decoder_block_forward(
            self.blocks[f"x_0_{self.depth}"], dense_x[f"x_0_{self.depth - 1}"], None)
        out = dense_x[f"x_0_{self.depth}"]
        return jnp.transpose(out, (0, 3, 1, 2))    # back to NCHW


# ----------------------------------------------------------------------------
# Demo
# ----------------------------------------------------------------------------
if __name__ == "__main__":
    key = jax.random.PRNGKey(0)
    k_feat, k_params = jax.random.split(key)

    # Small synthetic encoder pyramid (NCHW, like PyTorch):
    # f0: input-res feature (dropped by the decoder), f1..f3: strides 2,4,8.
    encoder_channels = (3, 8, 16, 32)
    decoder_channels = (16, 8, 8)
    N, Hin, Win = 2, 16, 16

    fkeys = jax.random.split(k_feat, 4)
    f0 = jax.random.normal(fkeys[0], (N, 3, Hin, Win), jnp.float32)
    f1 = jax.random.normal(fkeys[1], (N, 8, Hin // 2, Win // 2), jnp.float32)
    f2 = jax.random.normal(fkeys[2], (N, 16, Hin // 4, Win // 4), jnp.float32)
    f3 = jax.random.normal(fkeys[3], (N, 32, Hin // 8, Win // 8), jnp.float32)

    decoder = EfficientUnetPlusPlusDecoderPallas(
        encoder_channels, decoder_channels, key=k_params,
        squeeze_ratio=1, expansion_ratio=1)

    out = decoder(f0, f1, f2, f3)
    out = jax.block_until_ready(out)
    assert out.shape == (N, decoder_channels[-1], Hin, Win), out.shape
    assert bool(jnp.all(jnp.isfinite(out)))
    print("KERNEL_OK")
</pallas_src>

<mosaic_0001>
module attributes {stable_mosaic.version = 11 : i64} {
  func.func @_ir_kernel(%arg0: i32, %arg1: memref<1x4x4x48xf32, #tpu.memory_space<vmem>>, %arg2: memref<48x48xf32, #tpu.memory_space<vmem>>, %arg3: memref<1x48xf32, #tpu.memory_space<vmem>>, %arg4: memref<3x3x48xf32, #tpu.memory_space<vmem>>, %arg5: memref<1x48xf32, #tpu.memory_space<vmem>>, %arg6: memref<48x48xf32, #tpu.memory_space<vmem>>, %arg7: memref<1x48xf32, #tpu.memory_space<vmem>>, %arg8: memref<48x48xf32, #tpu.memory_space<vmem>>, %arg9: memref<1x48xf32, #tpu.memory_space<vmem>>, %arg10: memref<1x48xf32, #tpu.memory_space<vmem>>, %arg11: memref<1x1xf32, #tpu.memory_space<vmem>>, %arg12: memref<48x16xf32, #tpu.memory_space<vmem>>, %arg13: memref<1x16xf32, #tpu.memory_space<vmem>>, %arg14: memref<48x16xf32, #tpu.memory_space<vmem>>, %arg15: memref<1x16xf32, #tpu.memory_space<vmem>>, %arg16: memref<1x4x4x16xf32, #tpu.memory_space<vmem>>, %arg17: memref<6x6x48xf32, #tpu.memory_space<vmem>>) attributes {dimension_semantics = [#tpu.dimension_semantics<parallel>], iteration_bounds = array<i64: 2>, scalar_prefetch = 0 : i64, scratch_operands = 1 : i64, tpu.core_type = #tpu.core_type<tc>, window_params = [{transform_indices = @transform_0, window_bounds = array<i64: 1, 4, 4, 48>}, {pipeline_mode = #tpu.pipeline_mode<synchronous>, transform_indices = @transform_1, window_bounds = array<i64: 48, 48>}, {pipeline_mode = #tpu.pipeline_mode<synchronous>, transform_indices = @transform_2, window_bounds = array<i64: 1, 48>}, {pipeline_mode = #tpu.pipeline_mode<synchronous>, transform_indices = @transform_3, window_bounds = array<i64: 3, 3, 48>}, {pipeline_mode = #tpu.pipeline_mode<synchronous>, transform_indices = @transform_4, window_bounds = array<i64: 1, 48>}, {pipeline_mode = #tpu.pipeline_mode<synchronous>, transform_indices = @transform_5, window_bounds = array<i64: 48, 48>}, {pipeline_mode = #tpu.pipeline_mode<synchronous>, transform_indices = @transform_6, window_bounds = array<i64: 1, 48>}, {pipeline_mode = #tpu.pipeline_mode<synchronous>, transform_indices = @transform_7, window_bounds = array<i64: 48, 48>}, {pipeline_mode = #tpu.pipeline_mode<synchronous>, transform_indices = @transform_8, window_bounds = array<i64: 1, 48>}, {pipeline_mode = #tpu.pipeline_mode<synchronous>, transform_indices = @transform_9, window_bounds = array<i64: 1, 48>}, {pipeline_mode = #tpu.pipeline_mode<synchronous>, transform_indices = @transform_10, window_bounds = array<i64: 1, 1>}, {pipeline_mode = #tpu.pipeline_mode<synchronous>, transform_indices = @transform_11, window_bounds = array<i64: 48, 16>}, {pipeline_mode = #tpu.pipeline_mode<synchronous>, transform_indices = @transform_12, window_bounds = array<i64: 1, 16>}, {pipeline_mode = #tpu.pipeline_mode<synchronous>, transform_indices = @transform_13, window_bounds = array<i64: 48, 16>}, {pipeline_mode = #tpu.pipeline_mode<synchronous>, transform_indices = @transform_14, window_bounds = array<i64: 1, 16>}, {transform_indices = @transform_15, window_bounds = array<i64: 1, 4, 4, 16>}]} {
    %c0 = arith.constant 0 : index
    %c0_0 = arith.constant 0 : index
    %c0_1 = arith.constant 0 : index
    %c0_2 = arith.constant 0 : index
    %0 = vector.load %arg1[%c0, %c0_0, %c0_1, %c0_2] : memref<1x4x4x48xf32, #tpu.memory_space<vmem>>, vector<1x4x4x48xf32>
    %1 = vector.shape_cast %0 : vector<1x4x4x48xf32> to vector<4x4x48xf32>
    %2 = vector.shape_cast %1 : vector<4x4x48xf32> to vector<16x48xf32>
    %c0_3 = arith.constant 0 : index
    %c0_4 = arith.constant 0 : index
    %3 = vector.load %arg2[%c0_3, %c0_4] : memref<48x48xf32, #tpu.memory_space<vmem>>, vector<48x48xf32>
    %cst = arith.constant dense<0.000000e+00> : vector<16x48xf32>
    %4 = tpu.matmul %2, %3, %cst {dimension_numbers = #tpu.dot_dimension_numbers<[1], [0], [0], [1], [0, 0, 1, 1], [], []>} : vector<16x48xf32>, vector<48x48xf32>, vector<16x48xf32> -> vector<16x48xf32>
    %c0_5 = arith.constant 0 : index
    %c0_6 = arith.constant 0 : index
    %5 = vector.load %arg3[%c0_5, %c0_6] : memref<1x48xf32, #tpu.memory_space<vmem>>, vector<1x48xf32>
    %6 = vector.broadcast %5 : vector<1x48xf32> to vector<16x48xf32>
    %7 = arith.addf %4, %6 : vector<16x48xf32>
    %cst_7 = arith.constant 3.000000e+00 : f32
    %8 = vector.broadcast %cst_7 : f32 to vector<16x48xf32>
    %9 = arith.addf %7, %8 : vector<16x48xf32>
    %cst_8 = arith.constant 0.000000e+00 : f32
    %cst_9 = arith.constant 6.000000e+00 : f32
    %10 = vector.broadcast %cst_8 : f32 to vector<16x48xf32>
    %11 = arith.maximumf %10, %9 : vector<16x48xf32>
    %12 = vector.broadcast %cst_9 : f32 to vector<16x48xf32>
    %13 = arith.minimumf %12, %11 : vector<16x48xf32>
    %14 = arith.mulf %7, %13 : vector<16x48xf32>
    %cst_10 = arith.constant 0.166666672 : f32
    %15 = vector.broadcast %cst_10 : f32 to vector<16x48xf32>
    %16 = arith.mulf %14, %15 : vector<16x48xf32>
    %cst_11 = arith.constant 0.000000e+00 : f32
    %17 = vector.broadcast %cst_11 : f32 to vector<6x6x48xf32>
    %c0_12 = arith.constant 0 : index
    %c0_13 = arith.constant 0 : index
    %c0_14 = arith.constant 0 : index
    %18 = vector.load %arg17[%c0_12, %c0_13, %c0_14] : memref<6x6x48xf32, #tpu.memory_space<vmem>>, vector<6x6x48xf32>
    tpu.vector_store %arg17[%c0_12, %c0_13, %c0_14], %17 {strides = array<i32>} : memref<6x6x48xf32, #tpu.memory_space<vmem>>, vector<6x6x48xf32>,
    %19 = vector.shape_cast %16 : vector<16x48xf32> to vector<4x4x48xf32>
    %c1 = arith.constant 1 : index
    %c1_15 = arith.constant 1 : index
    %c0_16 = arith.constant 0 : index
    %20 = vector.load %arg17[%c1, %c1_15, %c0_16] : memref<6x6x48xf32, #tpu.memory_space<vmem>>, vector<4x4x48xf32>
    tpu.vector_store %arg17[%c1, %c1_15, %c0_16], %19 {strides = array<i32>} : memref<6x6x48xf32, #tpu.memory_space<vmem>>, vector<4x4x48xf32>,
    %c0_17 = arith.constant 0 : index
    %c0_18 = arith.constant 0 : index
    %c0_19 = arith.constant 0 : index
    %21 = vector.load %arg17[%c0_17, %c0_18, %c0_19] : memref<6x6x48xf32, #tpu.memory_space<vmem>>, vector<6x6x48xf32>
    %c0_20 = arith.constant 0 : index
    %c0_21 = arith.constant 0 : index
    %c0_22 = arith.constant 0 : index
    %22 = vector.load %arg4[%c0_20, %c0_21, %c0_22] : memref<3x3x48xf32, #tpu.memory_space<vmem>>, vector<3x3x48xf32>
    %cst_23 = arith.constant 0.000000e+00 : f32
    %23 = vector.broadcast %cst_23 : f32 to vector<4x4x48xf32>
    %24 = vector.extract_strided_slice %21 {offsets = [0, 0, 0], sizes = [4, 4, 48], strides = [1, 1, 1]} : vector<6x6x48xf32> to vector<4x4x48xf32>
    %25 = vector.extract_strided_slice %22 {offsets = [0, 0, 0], sizes = [1, 1, 48], strides = [1, 1, 1]} : vector<3x3x48xf32> to vector<1x1x48xf32>
    %26 = vector.shape_cast %25 : vector<1x1x48xf32> to vector<48xf32>
    %27 = vector.shape_cast %26 : vector<48xf32> to vector<1x1x48xf32>
    %28 = vector.broadcast %27 : vector<1x1x48xf32> to vector<4x4x48xf32>
    %29 = arith.mulf %24, %28 : vector<4x4x48xf32>
    %30 = arith.addf %23, %29 : vector<4x4x48xf32>
    %31 = vector.extract_strided_slice %21 {offsets = [0, 1, 0], sizes = [4, 4, 48], strides = [1, 1, 1]} : vector<6x6x48xf32> to vector<4x4x48xf32>
    %32 = vector.extract_strided_slice %22 {offsets = [0, 1, 0], sizes = [1, 1, 48], strides = [1, 1, 1]} : vector<3x3x48xf32> to vector<1x1x48xf32>
    %33 = vector.shape_cast %32 : vector<1x1x48xf32> to vector<48xf32>
    %34 = vector.shape_cast %33 : vector<48xf32> to vector<1x1x48xf32>
    %35 = vector.broadcast %34 : vector<1x1x48xf32> to vector<4x4x48xf32>
    %36 = arith.mulf %31, %35 : vector<4x4x48xf32>
    %37 = arith.addf %30, %36 : vector<4x4x48xf32>
    %38 = vector.extract_strided_slice %21 {offsets = [0, 2, 0], sizes = [4, 4, 48], strides = [1, 1, 1]} : vector<6x6x48xf32> to vector<4x4x48xf32>
    %39 = vector.extract_strided_slice %22 {offsets = [0, 2, 0], sizes = [1, 1, 48], strides = [1, 1, 1]} : vector<3x3x48xf32> to vector<1x1x48xf32>
    %40 = vector.shape_cast %39 : vector<1x1x48xf32> to vector<48xf32>
    %41 = vector.shape_cast %40 : vector<48xf32> to vector<1x1x48xf32>
    %42 = vector.broadcast %41 : vector<1x1x48xf32> to vector<4x4x48xf32>
    %43 = arith.mulf %38, %42 : vector<4x4x48xf32>
    %44 = arith.addf %37, %43 : vector<4x4x48xf32>
    %45 = vector.extract_strided_slice %21 {offsets = [1, 0, 0], sizes = [4, 4, 48], strides = [1, 1, 1]} : vector<6x6x48xf32> to vector<4x4x48xf32>
    %46 = vector.extract_strided_slice %22 {offsets = [1, 0, 0], sizes = [1, 1, 48], strides = [1, 1, 1]} : vector<3x3x48xf32> to vector<1x1x48xf32>
    %47 = vector.shape_cast %46 : vector<1x1x48xf32> to vector<48xf32>
    %48 = vector.shape_cast %47 : vector<48xf32> to vector<1x1x48xf32>
    %49 = vector.broadcast %48 : vector<1x1x48xf32> to vector<4x4x48xf32>
    %50 = arith.mulf %45, %49 : vector<4x4x48xf32>
    %51 = arith.addf %44, %50 : vector<4x4x48xf32>
    %52 = vector.extract_strided_slice %21 {offsets = [1, 1, 0], sizes = [4, 4, 48], strides = [1, 1, 1]} : vector<6x6x48xf32> to vector<4x4x48xf32>
    %53 = vector.extract_strided_slice %22 {offsets = [1, 1, 0], sizes = [1, 1, 48], strides = [1, 1, 1]} : vector<3x3x48xf32> to vector<1x1x48xf32>
    %54 = vector.shape_cast %53 : vector<1x1x48xf32> to vector<48xf32>
    %55 = vector.shape_cast %54 : vector<48xf32> to vector<1x1x48xf32>
    %56 = vector.broadcast %55 : vector<1x1x48xf32> to vector<4x4x48xf32>
    %57 = arith.mulf %52, %56 : vector<4x4x48xf32>
    %58 = arith.addf %51, %57 : vector<4x4x48xf32>
    %59 = vector.extract_strided_slice %21 {offsets = [1, 2, 0], sizes = [4, 4, 48], strides = [1, 1, 1]} : vector<6x6x48xf32> to vector<4x4x48xf32>
    %60 = vector.extract_strided_slice %22 {offsets = [1, 2, 0], sizes = [1, 1, 48], strides = [1, 1, 1]} : vector<3x3x48xf32> to vector<1x1x48xf32>
    %61 = vector.shape_cast %60 : vector<1x1x48xf32> to vector<48xf32>
    %62 = vector.shape_cast %61 : vector<48xf32> to vector<1x1x48xf32>
    %63 = vector.broadcast %62 : vector<1x1x48xf32> to vector<4x4x48xf32>
    %64 = arith.mulf %59, %63 : vector<4x4x48xf32>
    %65 = arith.addf %58, %64 : vector<4x4x48xf32>
    %66 = vector.extract_strided_slice %21 {offsets = [2, 0, 0], sizes = [4, 4, 48], strides = [1, 1, 1]} : vector<6x6x48xf32> to vector<4x4x48xf32>
    %67 = vector.extract_strided_slice %22 {offsets = [2, 0, 0], sizes = [1, 1, 48], strides = [1, 1, 1]} : vector<3x3x48xf32> to vector<1x1x48xf32>
    %68 = vector.shape_cast %67 : vector<1x1x48xf32> to vector<48xf32>
    %69 = vector.shape_cast %68 : vector<48xf32> to vector<1x1x48xf32>
    %70 = vector.broadcast %69 : vector<1x1x48xf32> to vector<4x4x48xf32>
    %71 = arith.mulf %66, %70 : vector<4x4x48xf32>
    %72 = arith.addf %65, %71 : vector<4x4x48xf32>
    %73 = vector.extract_strided_slice %21 {offsets = [2, 1, 0], sizes = [4, 4, 48], strides = [1, 1, 1]} : vector<6x6x48xf32> to vector<4x4x48xf32>
    %74 = vector.extract_strided_slice %22 {offsets = [2, 1, 0], sizes = [1, 1, 48], strides = [1, 1, 1]} : vector<3x3x48xf32> to vector<1x1x48xf32>
    %75 = vector.shape_cast %74 : vector<1x1x48xf32> to vector<48xf32>
    %76 = vector.shape_cast %75 : vector<48xf32> to vector<1x1x48xf32>
    %77 = vector.broadcast %76 : vector<1x1x48xf32> to vector<4x4x48xf32>
    %78 = arith.mulf %73, %77 : vector<4x4x48xf32>
    %79 = arith.addf %72, %78 : vector<4x4x48xf32>
    %80 = vector.extract_strided_slice %21 {offsets = [2, 2, 0], sizes = [4, 4, 48], strides = [1, 1, 1]} : vector<6x6x48xf32> to vector<4x4x48xf32>
    %81 = vector.extract_strided_slice %22 {offsets = [2, 2, 0], sizes = [1, 1, 48], strides = [1, 1, 1]} : vector<3x3x48xf32> to vector<1x1x48xf32>
    %82 = vector.shape_cast %81 : vector<1x1x48xf32> to vector<48xf32>
    %83 = vector.shape_cast %82 : vector<48xf32> to vector<1x1x48xf32>
    %84 = vector.broadcast %83 : vector<1x1x48xf32> to vector<4x4x48xf32>
    %85 = arith.mulf %80, %84 : vector<4x4x48xf32>
    %86 = arith.addf %79, %85 : vector<4x4x48xf32>
    %87 = vector.shape_cast %86 : vector<4x4x48xf32> to vector<16x48xf32>
    %c0_24 = arith.constant 0 : index
    %c0_25 = arith.constant 0 : index
    %88 = vector.load %arg5[%c0_24, %c0_25] : memref<1x48xf32, #tpu.memory_space<vmem>>, vector<1x48xf32>
    %89 = vector.broadcast %88 : vector<1x48xf32> to vector<16x48xf32>
    %90 = arith.addf %87, %89 : vector<16x48xf32>
    %cst_26 = arith.constant 3.000000e+00 : f32
    %91 = vector.broadcast %cst_26 : f32 to vector<16x48xf32>
    %92 = arith.addf %90, %91 : vector<16x48xf32>
    %cst_27 = arith.constant 0.000000e+00 : f32
    %cst_28 = arith.constant 6.000000e+00 : f32
    %93 = vector.broadcast %cst_27 : f32 to vector<16x48xf32>
    %94 = arith.maximumf %93, %92 : vector<16x48xf32>
    %95 = vector.broadcast %cst_28 : f32 to vector<16x48xf32>
    %96 = arith.minimumf %95, %94 : vector<16x48xf32>
    %97 = arith.mulf %90, %96 : vector<16x48xf32>
    %cst_29 = arith.constant 0.166666672 : f32
    %98 = vector.broadcast %cst_29 : f32 to vector<16x48xf32>
    %99 = arith.mulf %97, %98 : vector<16x48xf32>
    %cst_30 = arith.constant dense<0.000000e+00> : vector<48xf32>
    %100 = vector.multi_reduction <add>, %99, %cst_30 [0] : vector<16x48xf32> to vector<48xf32>
    %101 = vector.shape_cast %100 : vector<48xf32> to vector<1x48xf32>
    %cst_31 = arith.constant 1.600000e+01 : f32
    %102 = vector.broadcast %cst_31 : f32 to vector<1x48xf32>
    %103 = arith.divf %101, %102 : vector<1x48xf32>
    %c0_32 = arith.constant 0 : index
    %c0_33 = arith.constant 0 : index
    %104 = vector.load %arg6[%c0_32, %c0_33] : memref<48x48xf32, #tpu.memory_space<vmem>>, vector<48x48xf32>
    %cst_34 = arith.constant dense<0.000000e+00> : vector<1x48xf32>
    %105 = tpu.matmul %103, %104, %cst_34 {dimension_numbers = #tpu.dot_dimension_numbers<[1], [0], [0], [1], [0, 0, 1, 1], [], []>} : vector<1x48xf32>, vector<48x48xf32>, vector<1x48xf32> -> vector<1x48xf32>
    %c0_35 = arith.constant 0 : index
    %c0_36 = arith.constant 0 : index
    %106 = vector.load %arg7[%c0_35, %c0_36] : memref<1x48xf32, #tpu.memory_space<vmem>>, vector<1x48xf32>
    %107 = arith.addf %105, %106 : vector<1x48xf32>
    %cst_37 = arith.constant 0.000000e+00 : f32
    %108 = vector.broadcast %cst_37 : f32 to vector<1x48xf32>
    %109 = arith.maximumf %107, %108 : vector<1x48xf32>
    %c0_38 = arith.constant 0 : index
    %c0_39 = arith.constant 0 : index
    %110 = vector.load %arg8[%c0_38, %c0_39] : memref<48x48xf32, #tpu.memory_space<vmem>>, vector<48x48xf32>
    %cst_40 = arith.constant dense<0.000000e+00> : vector<1x48xf32>
    %111 = tpu.matmul %109, %110, %cst_40 {dimension_numbers = #tpu.dot_dimension_numbers<[1], [0], [0], [1], [0, 0, 1, 1], [], []>} : vector<1x48xf32>, vector<48x48xf32>, vector<1x48xf32> -> vector<1x48xf32>
    %c0_41 = arith.constant 0 : index
    %c0_42 = arith.constant 0 : index
    %112 = vector.load %arg9[%c0_41, %c0_42] : memref<1x48xf32, #tpu.memory_space<vmem>>, vector<1x48xf32>
    %113 = arith.addf %111, %112 : vector<1x48xf32>
    %114 = arith.negf %113 : vector<1x48xf32>
    %115 = math.exp %114 : vector<1x48xf32>
    %cst_43 = arith.constant 1.000000e+00 : f32
    %116 = vector.broadcast %cst_43 : f32 to vector<1x48xf32>
    %117 = arith.addf %116, %115 : vector<1x48xf32>
    %118 = arith.divf %116, %117 : vector<1x48xf32>
    %c0_44 = arith.constant 0 : index
    %c0_45 = arith.constant 0 : index
    %119 = vector.load %arg10[%c0_44, %c0_45] : memref<1x48xf32, #tpu.memory_space<vmem>>, vector<1x48xf32>
    %120 = vector.broadcast %119 : vector<1x48xf32> to vector<16x48xf32>
    %121 = arith.mulf %99, %120 : vector<16x48xf32>
    %cst_46 = arith.constant dense<0.000000e+00> : vector<16xf32>
    %122 = vector.multi_reduction <add>, %121, %cst_46 [1] : vector<16x48xf32> to vector<16xf32>
    %123 = vector.shape_cast %122 : vector<16xf32> to vector<16x1xf32>
    %c0_47 = arith.constant 0 : index
    %c0_48 = arith.constant 0 : index
    %124 = vector.load %arg11[%c0_47, %c0_48] : memref<1x1xf32, #tpu.memory_space<vmem>>, vector<1x1xf32>
    %125 = vector.broadcast %124 : vector<1x1xf32> to vector<16x1xf32>
    %126 = arith.addf %123, %125 : vector<16x1xf32>
    %127 = arith.negf %126 : vector<16x1xf32>
    %128 = math.exp %127 : vector<16x1xf32>
    %cst_49 = arith.constant 1.000000e+00 : f32
    %129 = vector.broadcast %cst_49 : f32 to vector<16x1xf32>
    %130 = arith.addf %129, %128 : vector<16x1xf32>
    %131 = arith.divf %129, %130 : vector<16x1xf32>
    %132 = vector.broadcast %118 : vector<1x48xf32> to vector<16x48xf32>
    %133 = arith.mulf %99, %132 : vector<16x48xf32>
    %134 = vector.broadcast %131 : vector<16x1xf32> to vector<16x48xf32>
    %135 = arith.mulf %99, %134 : vector<16x48xf32>
    %136 = arith.addf %133, %135 : vector<16x48xf32>
    %c0_50 = arith.constant 0 : index
    %c0_51 = arith.constant 0 : index
    %137 = vector.load %arg12[%c0_50, %c0_51] : memref<48x16xf32, #tpu.memory_space<vmem>>, vector<48x16xf32>
    %cst_52 = arith.constant dense<0.000000e+00> : vector<16x16xf32>
    %138 = tpu.matmul %136, %137, %cst_52 {dimension_numbers = #tpu.dot_dimension_numbers<[1], [0], [0], [1], [0, 0, 1, 1], [], []>} : vector<16x48xf32>, vector<48x16xf32>, vector<16x16xf32> -> vector<16x16xf32>
    %c0_53 = arith.constant 0 : index
    %c0_54 = arith.constant 0 : index
    %139 = vector.load %arg13[%c0_53, %c0_54] : memref<1x16xf32, #tpu.memory_space<vmem>>, vector<1x16xf32>
    %140 = vector.broadcast %139 : vector<1x16xf32> to vector<16x16xf32>
    %141 = arith.addf %138, %140 : vector<16x16xf32>
    %c0_55 = arith.constant 0 : index
    %c0_56 = arith.constant 0 : index
    %142 = vector.load %arg14[%c0_55, %c0_56] : memref<48x16xf32, #tpu.memory_space<vmem>>, vector<48x16xf32>
    %cst_57 = arith.constant dense<0.000000e+00> : vector<16x16xf32>
    %143 = tpu.matmul %2, %142, %cst_57 {dimension_numbers = #tpu.dot_dimension_numbers<[1], [0], [0], [1], [0, 0, 1, 1], [], []>} : vector<16x48xf32>, vector<48x16xf32>, vector<16x16xf32> -> vector<16x16xf32>
    %c0_58 = arith.constant 0 : index
    %c0_59 = arith.constant 0 : index
    %144 = vector.load %arg15[%c0_58, %c0_59] : memref<1x16xf32, #tpu.memory_space<vmem>>, vector<1x16xf32>
    %145 = vector.broadcast %144 : vector<1x16xf32> to vector<16x16xf32>
    %146 = arith.addf %143, %145 : vector<16x16xf32>
    %147 = arith.addf %141, %146 : vector<16x16xf32>
    %148 = vector.shape_cast %147 : vector<16x16xf32> to vector<4x4x16xf32>
    %c0_60 = arith.constant 0 : index
    %c0_61 = arith.constant 0 : index
    %c0_62 = arith.constant 0 : index
    %c0_63 = arith.constant 0 : index
    %149 = vector.load %arg16[%c0_60, %c0_61, %c0_62, %c0_63] : memref<1x4x4x16xf32, #tpu.memory_space<vmem>>, vector<1x4x4x16xf32>
    %150 = vector.shape_cast %149 : vector<1x4x4x16xf32> to vector<4x4x16xf32>
    %151 = vector.shape_cast %148 : vector<4x4x16xf32> to vector<1x4x4x16xf32>
    tpu.vector_store %arg16[%c0_60, %c0_61, %c0_62, %c0_63], %151 {strides = array<i32>} : memref<1x4x4x16xf32, #tpu.memory_space<vmem>>, vector<1x4x4x16xf32>,
    return
  }
  func.func @transform_0(%arg0: i32) -> (i32, i32, i32, i32) {
    %c0_i32 = arith.constant 0 : i32
    %c0_i32_0 = arith.constant 0 : i32
    %c0_i32_1 = arith.constant 0 : i32
    %c0_i32_2 = arith.constant 0 : i32
    return %arg0, %c0_i32, %c0_i32_0, %c0_i32_1 : i32, i32, i32, i32
  }
  func.func @transform_1(%arg0: i32) -> (i32, i32) {
    %c0_i32 = arith.constant 0 : i32
    %c0_i32_0 = arith.constant 0 : i32
    %c0_i32_1 = arith.constant 0 : i32
    return %c0_i32, %c0_i32_0 : i32, i32
  }
  func.func @transform_2(%arg0: i32) -> (i32, i32) {
    %c0_i32 = arith.constant 0 : i32
    %c0_i32_0 = arith.constant 0 : i32
    %c0_i32_1 = arith.constant 0 : i32
    return %c0_i32, %c0_i32_0 : i32, i32
  }
  func.func @transform_3(%arg0: i32) -> (i32, i32, i32) {
    %c0_i32 = arith.constant 0 : i32
    %c0_i32_0 = arith.constant 0 : i32
    %c0_i32_1 = arith.constant 0 : i32
    %c0_i32_2 = arith.constant 0 : i32
    return %c0_i32, %c0_i32_0, %c0_i32_1 : i32, i32, i32
  }
  func.func @transform_4(%arg0: i32) -> (i32, i32) {
    %c0_i32 = arith.constant 0 : i32
    %c0_i32_0 = arith.constant 0 : i32
    %c0_i32_1 = arith.constant 0 : i32
    return %c0_i32, %c0_i32_0 : i32, i32
  }
  func.func @transform_5(%arg0: i32) -> (i32, i32) {
    %c0_i32 = arith.constant 0 : i32
    %c0_i32_0 = arith.constant 0 : i32
    %c0_i32_1 = arith.constant 0 : i32
    return %c0_i32, %c0_i32_0 : i32, i32
  }
  func.func @transform_6(%arg0: i32) -> (i32, i32) {
    %c0_i32 = arith.constant 0 : i32
    %c0_i32_0 = arith.constant 0 : i32
    %c0_i32_1 = arith.constant 0 : i32
    return %c0_i32, %c0_i32_0 : i32, i32
  }
  func.func @transform_7(%arg0: i32) -> (i32, i32) {
    %c0_i32 = arith.constant 0 : i32
    %c0_i32_0 = arith.constant 0 : i32
    %c0_i32_1 = arith.constant 0 : i32
    return %c0_i32, %c0_i32_0 : i32, i32
  }
  func.func @transform_8(%arg0: i32) -> (i32, i32) {
    %c0_i32 = arith.constant 0 : i32
    %c0_i32_0 = arith.constant 0 : i32
    %c0_i32_1 = arith.constant 0 : i32
    return %c0_i32, %c0_i32_0 : i32, i32
  }
  func.func @transform_9(%arg0: i32) -> (i32, i32) {
    %c0_i32 = arith.constant 0 : i32
    %c0_i32_0 = arith.constant 0 : i32
    %c0_i32_1 = arith.constant 0 : i32
    return %c0_i32, %c0_i32_0 : i32, i32
  }
  func.func @transform_10(%arg0: i32) -> (i32, i32) {
    %c0_i32 = arith.constant 0 : i32
    %c0_i32_0 = arith.constant 0 : i32
    %c0_i32_1 = arith.constant 0 : i32
    return %c0_i32, %c0_i32_0 : i32, i32
  }
  func.func @transform_11(%arg0: i32) -> (i32, i32) {
    %c0_i32 = arith.constant 0 : i32
    %c0_i32_0 = arith.constant 0 : i32
    %c0_i32_1 = arith.constant 0 : i32
    return %c0_i32, %c0_i32_0 : i32, i32
  }
  func.func @transform_12(%arg0: i32) -> (i32, i32) {
    %c0_i32 = arith.constant 0 : i32
    %c0_i32_0 = arith.constant 0 : i32
    %c0_i32_1 = arith.constant 0 : i32
    return %c0_i32, %c0_i32_0 : i32, i32
  }
  func.func @transform_13(%arg0: i32) -> (i32, i32) {
    %c0_i32 = arith.constant 0 : i32
    %c0_i32_0 = arith.constant 0 : i32
    %c0_i32_1 = arith.constant 0 : i32
    return %c0_i32, %c0_i32_0 : i32, i32
  }
  func.func @transform_14(%arg0: i32) -> (i32, i32) {
    %c0_i32 = arith.constant 0 : i32
    %c0_i32_0 = arith.constant 0 : i32
    %c0_i32_1 = arith.constant 0 : i32
    return %c0_i32, %c0_i32_0 : i32, i32
  }
  func.func @transform_15(%arg0: i32) -> (i32, i32, i32, i32) {
    %c0_i32 = arith.constant 0 : i32
    %c0_i32_0 = arith.constant 0 : i32
    %c0_i32_1 = arith.constant 0 : i32
    %c0_i32_2 = arith.constant 0 : i32
    return %arg0, %c0_i32, %c0_i32_0, %c0_i32_1 : i32, i32, i32, i32
  }
}

</mosaic_0001>

<bundles_post_ra>
// kernel: tpu_custom_call.1
= control target key start
LH: loop header
LB: loop body
LE: loop exit
PB: predicated region body
PF: predicated region fallthrough
CT: control target
= control target key end

     0   :  { %s2369_s0 = inlined_call_operand.vmem [shape: f32[2,4,4,48], index: 0, kind: input, shape index: {}]   ;;  %s2370_s1 = inlined_call_operand.vmem [shape: f32[48,48], index: 1, kind: input, shape index: {}]   ;;  %s2371_s2 = inlined_call_operand.vmem [shape: f32[1,48], index: 2, kind: input, shape index: {}]   ;;  %s2372_s3 = inlined_call_operand.hbm [shape: f32[3,3,48], index: 3, kind: input, shape index: {}]   ;;  %s2373_s4 = inlined_call_operand.vmem [shape: f32[1,48], index: 4, kind: input, shape index: {}]   ;;  %s2374_s5 = inlined_call_operand.vmem [shape: f32[48,48], index: 5, kind: input, shape index: {}]   ;;  %s2375_s6 = inlined_call_operand.vmem [shape: f32[1,48], index: 6, kind: input, shape index: {}]   ;;  %s2376_s7 = inlined_call_operand.hbm [shape: f32[48,48], index: 7, kind: input, shape index: {}]   ;;  %s2377_s8 = inlined_call_operand.vmem [shape: f32[1,48], index: 8, kind: input, shape index: {}]   ;;  %s2378_s9 = inlined_call_operand.hbm [shape: f32[1,48], index: 9, kind: input, shape index: {}]   ;;  %s2379_s10 = inlined_call_operand.<no memory space> [shape: f32[1,1], index: 10, kind: input, shape index: {}]   ;;  %s2380_s11 = inlined_call_operand.vmem [shape: f32[48,16], index: 11, kind: input, shape index: {}]   ;;  %s2381_s12 = inlined_call_operand.vmem [shape: f32[1,16], index: 12, kind: input, shape index: {}]   ;;  %s2382_s13 = inlined_call_operand.vmem [shape: f32[48,16], index: 13, kind: input, shape index: {}]   ;;  %s2383_s14 = inlined_call_operand.vmem [shape: f32[1,16], index: 14, kind: input, shape index: {}]   ;;  %s2384_s15 = inlined_call_operand.hbm [shape: f32[2,4,4,16], index: 15, kind: output, shape index: {}]  }
   0x1   :  { %v20_v0 = vstv %s2379_s10 }
   0x2   :  { %21 = vst [vmem:[#allocation3] sm:$0x1] %v20_v0 }
   0x3   :  { %22 = vsyncpa [#allocation5], 0 }
   0x4   :  { %23 = vsyncpa [#allocation8], 0 }
   0x5   :  { %24 = vsyncpa [#allocation6], 0 }
   0x6   :  { %26 = vsyncpa [#allocation6 + $0x1], 0  ;;  %s1983_s20 = smov 0   ;;  %s1985_s21 = smov 0  }
   0x7   :  { %s1987_s22 = smov 0   ;;  %s1989_s23 = smov 0  }
   0x8 LB: > { %2392 = sst [smem:[#allocation14_spill]] %s1871_s20  ;;  %s2004_s10 = sadd.s32 4294967295, %s1883_s23   ;;  %s1883_s23 = sphi %s1989_s23, %s2410_s23   ;;  %s1879_s22 = sphi %s1987_s22, %s2412_s22   ;;  %s1875_s21 = sphi %s1985_s21, %s2414_s21   ;;  %s1871_s20 = sphi %s1983_s20, %s2413_s20  }
   0x9   : > { %2393 = sst [smem:[#allocation15_spill]] %s1879_s22  ;;  %s1490_s24 = sadd.s32 4294967294, %s1883_s23  }
   0xa   : > { %2394 = sst [smem:[#allocation16_spill]] %s1883_s23  ;;  %s2008_s25 = sadd.s32 1, %s1883_s23  }
   0xb   : > { %2395 = sst [smem:[#allocation17_spill]] %s2008_s25  ;;  %s359_s26 = sadd.s32 1, %s1879_s22 }
   0xc   : > { %s356_s27 = ssub.s32 %s1883_s23, %s2008_s25  ;;  %p369_p0 = scmp.ne.s32.totalorder %s1879_s22, %s1875_s21 }
   0xd   : > { %p357_p1 = scmp.eq.s32.totalorder %s356_s27, 0  ;;  %p370_p2 = scmp.eq.s32.totalorder %s2004_s10, 1 }
   0xe   : > { %p375_p3 = scmp.ne.s32.totalorder %s1875_s21, %s1871_s20  ;;  %p376_p4 = scmp.eq.s32.totalorder %s1490_s24, 1 }
   0xf   : > { %s2019_s28 = scalar_select %p357_p1, %s1879_s22, %s359_s26  }
  0x10   : > { %p2021_p5 = por %p370_p2, %p369_p0  ;;  %p2025_p6 = por %p376_p4, %p375_p3 }
  0x11   : > { %2396 = sst [smem:[#allocation18_spill]] %s2019_s28  ;;  %p1491_p7 = scmp.ge.s32.totalorder %s1883_s23, 1 }
  0x12   : > { %s2398_s30 = scalar_select %p2025_p6, 1, 0 }
  0x13   : > { %p383_p8 = scmp.lt.s32.totalorder %s1883_s23, 3  ;;  %p2388_p9 = scmp.eq.s32.totalorder %s2004_s10, 0 }
  0x14   : > { %2399 = sst [smem:[#allocation19_spill]] %s2398_s30  ;;  %s1885_s17 = smov [#allocation7]  }
  0x15   : > { %p2032_p10 = pnand %p1491_p7, %p383_p8  ;;  %s423_s18 = sshll.u32 %s1885_s17, 4  ;;  %s424_s18 = int_to_ptr.vmem [resolvable:$true] %s423_s18 }
  0x16   : > { %s1886_s24 = smov [#allocation4]   ;;  %s1748_s27 = scalar_lea.vmem %s424_s18, 768 }
  0x17   : > { %p1654_p11 = pneg %p2032_p10  ;;  %s401_s26 = sshll.u32 %s1886_s24, 4  ;;  %s402_s26 = int_to_ptr.vmem [resolvable:$true] %s401_s26 }
  0x18   : > { %p1749_p0 = scmp.ne.s32.totalorder %s424_s18, %s1748_s27  ;;  %p1756_p3 = scmp.lt.s32.totalorder %s424_s18, %s424_s18 }
  0x19   : > { %p2040_p12 = pnand %p2388_p9, %p1654_p11  ;;  %p1757_p4 = scmp.lt.s32.totalorder %s1748_s27, %s1748_s27 }
  0x1b   : > { %p1739_p13 = pneg %p2040_p12  ;;  %p1758_p7 = por %p1757_p4, %p1756_p3 }
  0x1d   : > { %p1751_p1 = pnand %p1749_p0, %p1739_p13 }
  0x1f   : > { %p1752_p2 = pneg %p1751_p1 }
  0x21   : > { %p1759_p8 = pnand %p1758_p7, %p1752_p2 }
  0x23   : > { %1762 = shalt.err (!%p1759_p8)
}
  0x24   : > { %s1887_s17 = smov 128   ;;  %s1888_s28 = smov 8  }
  0x25   : > { %1660 = dma.hbm_to_vmem [thread:$0]  (!%p2040_p12), %s2376_s7, 768, %s424_s18, [#allocation8], %s1887_s17, %s1887_s17, %s1888_s28  }
  0x26   : > { %s1774_s25 = scalar_lea.vmem %s402_s26, 192  ;;  %p1782_p9 = scmp.lt.s32.totalorder %s402_s26, %s402_s26 }
  0x27   : > { %p1775_p11 = scmp.ne.s32.totalorder %s402_s26, %s1774_s25  ;;  %p1783_p6 = scmp.lt.s32.totalorder %s1774_s25, %s1774_s25 }
  0x29   : > { %p1777_p0 = pnand %p1775_p11, %p1739_p13  ;;  %p1784_p3 = por %p1783_p6, %p1782_p9 }
  0x2b   : > { %p1778_p1 = pneg %p1777_p0 }
  0x2d   : > { %p1785_p2 = pnand %p1784_p3, %p1778_p1 }
  0x2f   : > { %1788 = shalt.err (!%p1785_p2)
}
  0x30   : > { %s1889_s27 = smov 64   ;;  %s1890_s30 = smov 4  }
  0x31   : > { %1657 = dma.hbm_to_vmem [thread:$0]  (!%p2040_p12), %s2372_s3, 192, %s402_s26, [#allocation5], %s1889_s27, %s1889_s27, %s1890_s30  }
  0x32   : > { %s1891_s22 = smov [#allocation9]  }
  0x33   : > { %s440_s28 = sshll.u32 %s1891_s22, 4  ;;  %s441_s28 = int_to_ptr.vmem [resolvable:$true] %s440_s28 }
  0x34   : > { %s1800_s18 = scalar_lea.vmem %s441_s28, 16  ;;  %s1807_s25 = scalar_lea.vmem %s441_s28, 32 }
  0x35   : > { %p1801_p4 = scmp.ne.s32.totalorder %s441_s28, %s1800_s18  ;;  %p1808_p9 = scmp.lt.s32.totalorder %s441_s28, %s441_s28 }
  0x36   : > { %p1809_p8 = scmp.lt.s32.totalorder %s1807_s25, %s1800_s18 }
  0x37   : > { %p1803_p7 = pnand %p1801_p4, %p1739_p13 }
  0x38   : > { %p1810_p11 = por %p1809_p8, %p1808_p9 }
  0x39   : > { %p1804_p6 = pneg %p1803_p7 }
  0x3b   : > { %p1811_p0 = pnand %p1810_p11, %p1804_p6 }
  0x3d   : > { %1814 = shalt.err (!%p1811_p0)
}
  0x3e   : > { %1663 = dma.hbm_to_vmem [thread:$0]  (!%p2040_p12), %s2378_s9, 16, %s441_s28, [#allocation8]  }
  0x3f   : > { %476 = sbr.rel (%p2032_p10) target bundleno = 1006 (0x3ee), region = 80  ;;  %p2402_p1 = scmp.eq.s32.totalorder (!%p2032_p10), %s2004_s10, 0 }
  0x44   : > { %1858 = dma.done.wait (%p2402_p1), [#allocation5], 192   ;;  %p2403_p13 = pmov %p2402_p1 }
  0x45   : > { %p2404_p3 = pmov %p2402_p1 }
  0x46   : > { %1860 = vsyncadd (%p2403_p13), [#allocation5], 4294967104 }
  0x47   : > { %1862 = dma.done.wait (%p2404_p3), [#allocation8], 784   ;;  %p2405_p2 = pmov %p2402_p1 }
  0x48   : > { %p532_p4 = scmp.lt.s32.totalorder %s2004_s10, 1  ;;  %v546_v1 = vld [vmem:[%s2370_s1 + $0x28] sm:$0xff]  ;;  %v545_v2 = vld [vmem:[%s2370_s1 + $0x20] sm:$0xff]  ;;  %v544_v3 = vld [vmem:[%s2370_s1 + $0x18] sm:$0xff]  ;;  %vm560_vm0 = vcmask 392192   ;;  %vm650_vm1 = vcmask 390144   ;;  %v678_v16 = vlaneseq }
  0x49   : > { %1864 = vsyncadd (%p2405_p2), [#allocation8], 4294966512  ;;  %1565 = vmatprep.subr.mxu0 %v546_v1  ;;  %v543_v5 = vld [vmem:[%s2370_s1 + $0x10] sm:$0xff]  ;;  %v542_v6 = vld [vmem:[%s2370_s1 + $0x8] sm:$0xff]  ;;  %v1892_v9 = vmov 0.0   ;;  %vm1893_vm2 = vmmov 0  }
  0x4a   : > { %s533_s23 = scalar_select %p532_p4, %s2004_s10, 1  ;;  %1566 = vmatpush3.msra.mxu0 %v546_v1  ;;  %v541_v7 = vld [vmem:[%s2370_s1] sm:$0xff]  ;;  %651 = vst.msk [vmem:[#allocation2] sm:$0x3f] %vm650_vm1, %v1892_v9  ;;  %654 = vst.msk [vmem:[#allocation2 + $0x18] sm:$0x3f] %vm650_vm1, %v1892_v9  ;;  %1580 = vmatprep.subr.mxu1 %v1892_v9 }
  0x4b   : > { %1567 = vmatprep.subr.mxu0 %v545_v2  ;;  %655 = vst.msk [vmem:[#allocation2 + $0x20] sm:$0x3f] %vm650_vm1, %v1892_v9  ;;  %656 = vst.msk [vmem:[#allocation2 + $0x28] sm:$0x3f] %vm650_vm1, %v1892_v9  ;;  %v915_v10 = vld [vmem:[%s2374_s5 + $0x28] sm:$0xff]  ;;  %v914_v11 = vld [vmem:[%s2374_s5 + $0x20] sm:$0xff]  ;;  %1592 = vmatprep.mubr.msk.f32.mxu1 %vm1893_vm2, %v1892_v9 }
  0x4c   : > { %s1525_s30 = sshll.u32 %s533_s23, 4  ;;  %1568 = vmatpush3.msra.mxu0 %v545_v2  ;;  %652 = vst.msk [vmem:[#allocation2 + $0x8] sm:$0x3f] %vm650_vm1, %v1892_v9  ;;  %653 = vst.msk [vmem:[#allocation2 + $0x10] sm:$0x3f] %vm650_vm1, %v1892_v9  ;;  %1581 = vmatpush3.msra.mxu1 %v915_v10  ;;  %v913_v12 = vld [vmem:[%s2374_s5 + $0x18] sm:$0xff] }
  0x4d   : > { %s536_s26 = scalar_lea.vmem %s2369_s0, %s1525_s30  ;;  %1569 = vmatprep.subr.mxu0 %v544_v3  ;;  %1582 = vmatprep.subr.mxu1 %v1892_v9  ;;  %v912_v13 = vld [vmem:[%s2374_s5 + $0x10] sm:$0xff]  ;;  %v911_v14 = vld [vmem:[%s2374_s5 + $0x8] sm:$0xff]  ;;  %v910_v15 = vld [vmem:[%s2374_s5] sm:$0xff]  ;;  %v2144_v17 = vshrl.u32 %v678_v16, 7  ;;  %vm664_vm3 = vcmask 388096   ;;  %s529_s17 = sand.u32 1, %s1875_s21  }
  0x4e   : > { %v2094_v4 = vld [vmem:[%s536_s26] sm:$0xff]   ;;  %1570 = vmatpush3.msra.mxu0 %v544_v3  ;;  %v2107_v8 = vld [vmem:[%s536_s26 + $0x8] sm:$0xff]   ;;  %1583 = vmatpush3.msra.mxu1 %v914_v11  ;;  %v675_v23 = vld [vmem:[#allocation4] sm:$0x7]  ;;  %s1500_s30 = sshll.u32 %s529_s17, 4  ;;  %vm1378_vm4 = vcmask 125952  }
  0x4f   : > { %1577 = vmatprep.mubr.msk.f32.mxu0 %vm560_vm0, %v2094_v4  ;;  %1571 = vmatprep.subr.mxu0 %v543_v5  ;;  %v1503_v18 = vld [vmem:[%s2371_s2] ss:$0 sm:$0xff]  ;;  %v692_v21 = vsub.s32 1, %v2144_v17  ;;  %v2151_v26 = vsub.s32 0, %v2144_v17  ;;  %v716_v30 = vsub.s32 2, %v2144_v17  ;;  %s531_s19 = scalar_lea.vmem [#allocation10], %s1500_s30 }
  0x50   : > { %1572 = vmatpush3.msra.mxu0 %v543_v5  ;;  %1584 = vmatprep.subr.mxu1 %v1892_v9  ;;  %v677_v47 = vld [vmem:[#allocation4 + $0x8] sm:$0x7]  ;;  %v676_v50 = vld [vmem:[#allocation4 + $0x4] sm:$0x7]  ;;  %s1397_s16 = sshll.u32 %s531_s19, 4  ;;  %s1526_s26 = sshll.u32 %s2004_s10, 8  ;;  %s2319_s16 = int_to_ptr.vmem [resolvable:$true] %s1397_s16 }
  0x51   : > { %1573 = vmatprep.subr.mxu0 %v542_v6  ;;  %1585 = vmatpush3.msra.mxu1 %v913_v12  ;;  %v2153_v29 = vrot.slane %v675_v23, %v692_v21  ;;  %v669_v31 = vld [vmem:[#allocation2] sm:$0x3f]  ;;  %v2157_v34 = vrot.slane %v675_v23, %v2151_v26  ;;  %v2160_v38 = vrot.slane %v675_v23, %v716_v30  ;;  %s2326_s22 = scalar_lea.hbm %s2384_s15, %s1526_s26  ;;  %s2329_s10 = scalar_lea.sflag [#allocation6], %s529_s17 }
  0x52   : > { %1574 = vmatpush3.msra.mxu0 %v542_v6  ;;  %1586 = vmatprep.subr.mxu1 %v1892_v9  ;;  %v2165_v51 = vrot.slane %v677_v47, %v2151_v26  ;;  %v2167_v52 = vrot.slane %v677_v47, %v692_v21  ;;  %v2169_v53 = vld [vmem:[#allocation2 + $0x28] sm:$0x3f]  ;;  %v2173_v55 = vrot.slane %v677_v47, %v716_v30  ;;  %s1815_s28 = scalar_lea.vmem %s2319_s16, 256  ;;  %s1897_s18 = smov [#allocation10]  }
  0x53   : > { %1575 = vmatprep.subr.mxu0 %v541_v7  ;;  %1587 = vmatpush3.msra.mxu1 %v912_v13  ;;  %v694_v37 = vmul.f32 %v2153_v29, %v669_v31  ;;  %v682_v41 = vmul.f32 %v2157_v34, %v669_v31  ;;  %v718_v45 = vmul.f32 %v2160_v38, %v669_v31  ;;  %p1816_p10 = scmp.ne.s32.totalorder %s2319_s16, %s1815_s28  ;;  %s1819_s25 = sshll.u32 %s1897_s18, 4  ;;  %s1820_s25 = int_to_ptr.vmem [resolvable:$false] %s1819_s25 }
  0x54   : > { %1576 = vmatpush3.msra.mxu0 %v541_v7  ;;  %1588 = vmatprep.subr.mxu1 %v1892_v9  ;;  %v741_v57 = vrot.slane %v676_v50, %v2151_v26  ;;  %v753_v58 = vrot.slane %v676_v50, %v692_v21  ;;  %v777_v60 = vrot.slane %v676_v50, %v716_v30  ;;  %s1821_s20 = scalar_lea.vmem %s1820_s25, 512  ;;  %p1822_p6 = scmp.lt.s32.totalorder %s2319_s16, %s1820_s25 }
  0x55   : > { %1578 = vmatmul.mubr.msk.f32.vlgmr.msra.gmra.mxu0 %vm560_vm0, %v2107_v8  ;;  %1595 = vmatprep.subr.mxu0 %v1892_v9  ;;  %v702_v44 = vrot.slane %v694_v37, 1  ;;  %v726_v49 = vrot.slane %v718_v45, 2  ;;  %v2180_v62 = vmul.f32 %v2165_v51, %v2169_v53  ;;  %v2184_v63 = vmul.f32 %v2167_v52, %v2169_v53  ;;  %p1817_p12 = pnand %p1816_p10, %p2021_p5  ;;  %p1823_p9 = scmp.lt.s32.totalorder %s1821_s20, %s1815_s28 }
  0x56   : > { %1607 = vmatprep.mubr.msk.f32.mxu0 %vm1893_vm2, %v1892_v9  ;;  %1589 = vmatpush3.msra.mxu1 %v911_v14 }
  0x57   : > { %1590 = vmatprep.subr.mxu1 %v1892_v9  ;;  %v710_v48 = vadd.f32 %v702_v44, %v682_v41  ;;  %p1818_p7 = pneg %p1817_p12  ;;  %p1824_p8 = por %p1823_p9, %p1822_p6 }
  0x58   : > { %1591 = vmatpush3.msra.mxu1 %v910_v15 }
  0x59   : > { %v734_v56 = vadd.f32 %v726_v49, %v710_v48  ;;  %p1825_p11 = pnand %p1824_p8, %p1818_p7 }
 0x115   : > { %v1579_v19 = vpop.f32.mrf.mxu0 }
 0x116   : > { %v637_v20 = vadd.f32 %v1579_v19, %v1503_v18 }
 0x117   : > { %v631_v22 = vpop.f32.mrf.mxu0 }
 0x118   : > { %v641_v24 = vadd.f32 3.0, %v637_v20  ;;  %v632_v25 = vadd.f32 %v1503_v18, %v631_v22 }
 0x11a   : > { %v643_v27 = vmax.f32 %v641_v24, 0.0  ;;  %v640_v28 = vadd.f32 3.0, %v632_v25 }
 0x11c   : > { %v645_v32 = vmin.f32 %v643_v27, 6.0  ;;  %v642_v33 = vmax.f32 %v640_v28, 0.0 }
 0x11e   : > { %v647_v35 = vmul.f32 %v645_v32, %v637_v20  ;;  %v644_v36 = vmin.f32 %v642_v33, 6.0 }
 0x120   : > { %v649_v39 = vmul.f32 0.16666667, %v647_v35  ;;  %v646_v40 = vmul.f32 %v644_v36, %v632_v25 }
 0x122   : > { %v660_v42 = vcombine.high %v649_v39, %v649_v39  ;;  %667 = vst.msk [vmem:[#allocation2 + $0x19] sm:$0xf] %vm664_vm3, %v649_v39  ;;  %v648_v43 = vmul.f32 0.16666667, %v646_v40 }
 0x124   : > { %668 = vst.msk [vmem:[#allocation2 + $0x21] sm:$0xf] %vm664_vm3, %v660_v42  ;;  %v659_v46 = vcombine.high %v648_v43, %v648_v43  ;;  %665 = vst.msk [vmem:[#allocation2 + $0x9] sm:$0xf] %vm664_vm3, %v648_v43 }
 0x126   : > { %666 = vst.msk [vmem:[#allocation2 + $0x11] sm:$0xf] %vm664_vm3, %v659_v46 }
 0x129   : > { %v2171_v54 = vld [vmem:[#allocation2 + $0x18] sm:$0x3f] }
 0x12a   : > { %v803_v61 = vmul.f32 %v2165_v51, %v2171_v54  ;;  %v2190_v3 = vmul.f32 %v2167_v52, %v2171_v54  ;;  %v2194_v10 = vmul.f32 %v2173_v55, %v2171_v54  ;;  %v685_v11 = vmul.f32 %v2157_v34, %v2171_v54 }
 0x12b   : > { %v670_v59 = vld [vmem:[#allocation2 + $0x8] sm:$0x3f]  ;;  %v697_v15 = vmul.f32 %v2153_v29, %v2171_v54  ;;  %v721_v20 = vmul.f32 %v2160_v38, %v2171_v54  ;;  %v756_v24 = vmul.f32 %v753_v58, %v2171_v54  ;;  %v673_v35 = vld [vmem:[#allocation2 + $0x20] sm:$0x3f] }
 0x12c   : > { %v695_v0 = vmul.f32 %v2153_v29, %v670_v59  ;;  %v719_v1 = vmul.f32 %v2160_v38, %v670_v59  ;;  %v742_v2 = vmul.f32 %v741_v57, %v670_v59  ;;  %v754_v6 = vmul.f32 %v753_v58, %v670_v59 }
 0x12d   : > { %v671_v5 = vld [vmem:[#allocation2 + $0x10] sm:$0x3f]  ;;  %v778_v7 = vmul.f32 %v777_v60, %v670_v59  ;;  %v683_v12 = vmul.f32 %v2157_v34, %v670_v59  ;;  %v705_v40 = vrot.slane %v697_v15, 1  ;;  %v729_v48 = vrot.slane %v721_v20, 2 }
 0x12e   : > { %v703_v13 = vrot.slane %v695_v0, 1  ;;  %v746_v14 = vadd.f32 %v742_v2, %v734_v56  ;;  %v755_v16 = vmul.f32 %v753_v58, %v671_v5  ;;  %v762_v18 = vrot.slane %v754_v6, 1 }
 0x12f   : > { %v779_v19 = vmul.f32 %v777_v60, %v671_v5  ;;  %v727_v22 = vrot.slane %v719_v1, 2  ;;  %v814_v23 = vmul.f32 %v2167_v52, %v671_v5  ;;  %v743_v25 = vmul.f32 %v741_v57, %v671_v5 }
 0x130   : > { %v711_v21 = vadd.f32 %v703_v13, %v683_v12  ;;  %v770_v27 = vadd.f32 %v762_v18, %v746_v14  ;;  %v786_v28 = vrot.slane %v778_v7, 2  ;;  %v802_v30 = vmul.f32 %v2165_v51, %v671_v5 }
 0x131   : > { %v763_v32 = vrot.slane %v755_v16, 1  ;;  %v838_v33 = vmul.f32 %v2173_v55, %v671_v5  ;;  %v696_v36 = vmul.f32 %v2153_v29, %v671_v5  ;;  %v787_v37 = vrot.slane %v779_v19, 2 }
 0x132   : > { %v735_v31 = vadd.f32 %v727_v22, %v711_v21  ;;  %v794_v39 = vadd.f32 %v786_v28, %v770_v27  ;;  %v720_v41 = vmul.f32 %v2160_v38, %v671_v5  ;;  %v822_v43 = vrot.slane %v814_v23, 1  ;;  %v1506_v38 = vld [vmem:[%s2373_s4] ss:$0 sm:$0xff] }
 0x133   : > { %v684_v44 = vmul.f32 %v2157_v34, %v671_v5  ;;  %v704_v45 = vrot.slane %v696_v36, 1  ;;  %v713_v47 = vadd.f32 %v705_v40, %v685_v11  ;;  %v757_v49 = vmul.f32 %v753_v58, %v673_v35 }
 0x134   : > { %v747_v42 = vadd.f32 %v743_v25, %v735_v31  ;;  %v806_v46 = vadd.f32 %v802_v30, %v794_v39  ;;  %v846_v56 = vrot.slane %v838_v33, 2  ;;  %v728_v0 = vrot.slane %v720_v41, 2 }
 0x135   : > { %v712_v59 = vadd.f32 %v704_v45, %v684_v44  ;;  %v737_v29 = vadd.f32 %v729_v48, %v713_v47  ;;  %v745_v2 = vmul.f32 %v741_v57, %v673_v35  ;;  %v781_v6 = vmul.f32 %v777_v60, %v673_v35 }
 0x136   : > { %v771_v50 = vadd.f32 %v763_v32, %v747_v42  ;;  %v830_v1 = vadd.f32 %v822_v43, %v806_v46  ;;  %v744_v34 = vmul.f32 %v741_v57, %v2171_v54  ;;  %v780_v5 = vmul.f32 %v777_v60, %v2171_v54 }
 0x137   : > { %v736_v12 = vadd.f32 %v728_v0, %v712_v59  ;;  %v749_v58 = vadd.f32 %v745_v2, %v737_v29  ;;  %v765_v13 = vrot.slane %v757_v49, 1  ;;  %v841_v14 = vmul.f32 %v2173_v55, %v2169_v53 }
 0x138   : > { %v795_v7 = vadd.f32 %v787_v37, %v771_v50  ;;  %v854_v11 = vadd.f32 %v846_v56, %v830_v1  ;;  %v823_v16 = vrot.slane %v2190_v3, 1  ;;  %v764_v19 = vrot.slane %v756_v24, 1  ;;  %v1510_v50 = vld [vmem:[#allocation9] ss:$0 sm:$0xff] }
 0x139   : > { %v748_v18 = vadd.f32 %v744_v34, %v736_v12  ;;  %v847_v20 = vrot.slane %v2194_v10, 2  ;;  %v773_v22 = vadd.f32 %v765_v13, %v749_v58  ;;  %v789_v23 = vrot.slane %v781_v6, 2 }
 0x13a   : > { %v807_v15 = vadd.f32 %v803_v61, %v795_v7  ;;  %v867_v21 = vadd.f32 %v1506_v38, %v854_v11  ;;  %v788_v27 = vrot.slane %v780_v5, 2  ;;  %v816_v54 = vmul.f32 %v2167_v52, %v673_v35 }
 0x13b   : > { %v772_v57 = vadd.f32 %v764_v19, %v748_v18  ;;  %v865_v60 = vcombine.high %v1506_v38, %v1506_v38  ;;  %v797_v30 = vadd.f32 %v789_v23, %v773_v22  ;;  %v825_v53 = vrot.slane %v2184_v63, 1 }
 0x13c   : > { %v831_v25 = vadd.f32 %v823_v16, %v807_v15  ;;  %v871_v28 = vadd.f32 3.0, %v867_v21  ;;  %v804_v3 = vmul.f32 %v2165_v51, %v673_v35  ;;  %v840_v24 = vmul.f32 %v2173_v55, %v673_v35 }
 0x13d   : > { %v796_v31 = vadd.f32 %v788_v27, %v772_v57  ;;  %v809_v32 = vadd.f32 %v2180_v62, %v797_v30  ;;  %v849_v33 = vrot.slane %v841_v14, 2  ;;  %v824_v39 = vrot.slane %v816_v54, 1 }
 0x13e   : > { %v855_v61 = vadd.f32 %v847_v20, %v831_v25  ;;  %v875_v10 = vmax.f32 %v871_v28, 0.0  ;;  %v848_v43 = vrot.slane %v840_v24, 2  ;;  %v1084_v0 = vcombine.high %v1510_v50, %v1510_v50  ;;  %v992_v24 = vld [vmem:[#allocation7 + $0x8] sm:$0xff] }
 0x13f   : > { %v808_v37 = vadd.f32 %v804_v3, %v796_v31  ;;  %v833_v52 = vadd.f32 %v825_v53, %v809_v32  ;;  %v1894_v30 = vmov 0   ;;  %v996_v53 = vld [vmem:[#allocation7 + $0x28] sm:$0xff]  ;;  %v994_v31 = vld [vmem:[#allocation7 + $0x18] sm:$0xff]  ;;  %v993_v3 = vld [vmem:[#allocation7 + $0x10] sm:$0xff] }
 0x140   : > { %v868_v36 = vadd.f32 %v865_v60, %v855_v61  ;;  %v879_v40 = vmin.f32 %v875_v10, 6.0  ;;  %1721 = vset.pattern.permute.xlu1 %v1894_v30  ;;  %1722 = vset.pattern.permute.xlu0 %v1894_v30  ;;  %v995_v61 = vld [vmem:[#allocation7 + $0x20] sm:$0xff]  ;;  %v1511_v32 = vld [vmem:[#allocation3] ss:$0 sm:$0xff] }
 0x141   : > { %v832_v42 = vadd.f32 %v824_v39, %v808_v37  ;;  %v857_v44 = vadd.f32 %v849_v33, %v833_v52  ;;  %1596 = vmatpush3.msra.mxu0 %v996_v53  ;;  %v991_v10 = vld [vmem:[#allocation7] sm:$0xff] }
 0x142   : > { %v872_v41 = vadd.f32 3.0, %v868_v36  ;;  %v883_v45 = vmul.f32 %v879_v40, %v867_v21  ;;  %1597 = vmatprep.subr.mxu0 %v1892_v9 }
 0x143   : > { %v856_v46 = vadd.f32 %v848_v43, %v832_v42  ;;  %v870_v47 = vadd.f32 %v865_v60, %v857_v44  ;;  %1598 = vmatpush3.msra.mxu0 %v995_v61 }
 0x144   : > { %v876_v63 = vmax.f32 %v872_v41, 0.0  ;;  %v2224_v49 = vmul.f32 0.16666667, %v883_v45  ;;  %1599 = vmatprep.subr.mxu0 %v1892_v9 }
 0x145   : > { %v869_v48 = vadd.f32 %v1506_v38, %v856_v46  ;;  %v874_v55 = vadd.f32 3.0, %v870_v47  ;;  %1600 = vmatpush3.msra.mxu0 %v994_v31 }
 0x146   : > { %v880_v51 = vmin.f32 %v876_v63, 6.0  ;;  %v1086_v2 = vmul.f32 %v1510_v50, %v2224_v49  ;;  %1601 = vmatprep.subr.mxu0 %v1892_v9 }
 0x147   : > { %v873_v62 = vadd.f32 3.0, %v869_v48  ;;  %v878_v56 = vmax.f32 %v874_v55, 0.0  ;;  %1602 = vmatpush3.msra.mxu0 %v993_v3  ;;  %v1287_v55 = vld [vmem:[%s2382_s13 + $0x28] sm:$0xff] }
 0x148   : > { %v884_v35 = vmul.f32 %v880_v51, %v868_v36  ;;  %1603 = vmatprep.subr.mxu0 %v1892_v9 }
 0x149   : > { %v877_v1 = vmax.f32 %v873_v62, 0.0  ;;  %v882_v29 = vmin.f32 %v878_v56, 6.0  ;;  %1604 = vmatpush3.msra.mxu0 %v992_v24  ;;  %v1286_v62 = vld [vmem:[%s2382_s13 + $0x20] sm:$0xff]  ;;  %v1187_v56 = vld [vmem:[%s2380_s11 + $0x18] sm:$0xff] }
 0x14a   : > { %v2226_v59 = vmul.f32 0.16666667, %v884_v35  ;;  %1605 = vmatprep.subr.mxu0 %v1892_v9  ;;  %v916_v9 = vld [vmem:[%s2375_s6] sm:$0x1]  ;;  %v1189_v35 = vld [vmem:[%s2380_s11 + $0x28] sm:$0xff] }
 0x14b   : > { %v881_v7 = vmin.f32 %v877_v1, 6.0  ;;  %v886_v12 = vmul.f32 %v882_v29, %v870_v47  ;;  %1606 = vmatpush3.msra.mxu0 %v991_v10  ;;  %1610 = vmatprep.subr.mxu1 %v1189_v35  ;;  %v1186_v1 = vld [vmem:[%s2380_s11 + $0x10] sm:$0xff]  ;;  %v1283_v29 = vld [vmem:[%s2382_s13 + $0x8] sm:$0xff] }
 0x14c   : > { %v1087_v6 = vmul.f32 %v1084_v0, %v2226_v59  ;;  %v895_v13 = vcombine.low %v2224_v49, %v2226_v59  ;;  %1625 = vmatprep.subr.mxu0 %v1287_v55 }
 0x14d   : > { %v885_v38 = vmul.f32 %v881_v7, %v869_v48  ;;  %v2230_v5 = vmul.f32 0.16666667, %v886_v12  ;;  %v1184_v7 = vld [vmem:[%s2380_s11] sm:$0xff] }
 0x14e   : > { %v1094_v34 = vcombine.low %v1086_v2, %v1087_v6  ;;  %v899_v19 = vsel %vm560_vm0, %v895_v13, 0.0  ;;  %v1185_v2 = vld [vmem:[%s2380_s11 + $0x8] sm:$0xff]  ;;  %v1282_v6 = vld [vmem:[%s2382_s13] sm:$0xff] }
 0x14f   : > { %v2233_v58 = vmul.f32 0.16666667, %v885_v38  ;;  %v1089_v15 = vmul.f32 %v1084_v0, %v2230_v5  ;;  %v1284_v0 = vld [vmem:[%s2382_s13 + $0x10] sm:$0xff]  ;;  %v997_v12 = vld [vmem:[%s2377_s8] sm:$0x1] }
 0x150   : > { %v1098_v11 = vsel %vm560_vm0, %v1094_v34, 0.0 }
 0x151   : > { %1099 = vadd.xlane.f32.xlu0 %v1098_v11  ;;  %v1088_v14 = vmul.f32 %v1510_v50, %v2233_v58  ;;  %v896_v16 = vcombine.low %v2233_v58, %v2230_v5  ;;  %v1188_v50 = vld [vmem:[%s2380_s11 + $0x20] sm:$0xff] }
 0x153   : > { %v1095_v18 = vcombine.low %v1088_v14, %v1089_v15  ;;  %v900_v20 = vsel %vm560_vm0, %v896_v16, 0.0  ;;  %v1895_v16 = vmov 839922192  }
 0x154   : > { %v901_v21 = vadd.f32 %v900_v20, %v899_v19  ;;  %v1896_v19 = vmov 1985246804  }
 0x155   : > { %v1101_v22 = vsel %vm560_vm0, %v1095_v18, 0.0  ;;  %v1145_v18 = vunpack.c.l.s4 %v1895_v16  ;;  %v1152_v20 = vunpack.c.l.s4 %v1896_v19 }
 0x156   : > { %1102 = vadd.xlane.f32.xlu0 %v1101_v22  ;;  %v902_v23 = vrot.slane %v901_v21, 4 }
 0x157   : > { %v1153_v22 = vunpack.c.0.s8 %v1152_v20 }
 0x158   : > { %v903_v25 = vadd.f32 %v902_v23, %v901_v21  ;;  %v1146_v21 = vunpack.c.0.s8 %v1145_v18 }
 0x15a   : > { %v904_v57 = vrot.slane %v903_v25, 2 }
 0x15c   : > { %v905_v27 = vadd.f32 %v904_v57, %v903_v25  ;;  %v1156_v25 = vsub.s32 %v1153_v22, %v2144_v17 }
 0x15e   : > { %v906_v54 = vrot.slane %v905_v27, 1 }
 0x160   : > { %v907_v60 = vadd.f32 %v906_v54, %v905_v27 }
 0x162   : > { %v909_v28 = vmul.f32 0.0625, %v907_v60 }
 0x164   : > { %1593 = vmatmul.mubr.msk.f32.vlgmr.msra.gmra.mxu1 %vm560_vm0, %v909_v28 }
 0x165   : > { %1611 = vmatpush3.msra.mxu1 %v1189_v35 }
 0x166   : > { %1612 = vmatprep.subr.mxu1 %v1188_v50 }
 0x167   : > { %1613 = vmatpush3.msra.mxu1 %v1188_v50 }
 0x168   : > { %1614 = vmatprep.subr.mxu1 %v1187_v56 }
 0x169   : > { %1615 = vmatpush3.msra.mxu1 %v1187_v56 }
 0x16a   : > { %1616 = vmatprep.subr.mxu1 %v1186_v1 }
 0x16b   : > { %1617 = vmatpush3.msra.mxu1 %v1186_v1 }
 0x16c   : > { %1618 = vmatprep.subr.mxu1 %v1185_v2 }
 0x16d   : > { %1619 = vmatpush3.msra.mxu1 %v1185_v2 }
 0x16e   : > { %1620 = vmatprep.subr.mxu1 %v1184_v7 }
 0x16f   : > { %1621 = vmatpush3.msra.mxu1 %v1184_v7 }
 0x1da   : > { %v1100_v33 = vpop.xlane.xlu0 %1099 }
 0x1db   : > { %v1111_v36 = vadd.f32 %v1511_v32, %v1100_v33 }
 0x1dd   : > { %v1512_v37 = vmul.f32 -1.442695, %v1111_v36 }
 0x1df   : > { %1725 = vpow2.f32 %v1512_v37  ;;  %v1103_v39 = vpop.xlane.xlu0 %1102 }
 0x1e0   : > { %v1112_v40 = vadd.f32 %v1511_v32, %v1103_v39 }
 0x1e2   : > { %v1513_v52 = vmul.f32 -1.442695, %v1112_v40 }
 0x1e4   : > { %1727 = vpow2.f32 %v1513_v52 }
 0x1ec   : > { %v1726_v41 = vpop.eup %1725 }
 0x1ed   : > { %v1119_v42 = vadd.f32 1.0, %v1726_v41 }
 0x1ef   : > { %1729 = vrcp.f32 %v1119_v42 }
 0x1f1   : > { %v1728_v43 = vpop.eup %1727 }
 0x1f2   : > { %v1120_v44 = vadd.f32 1.0, %v1728_v43 }
 0x1f4   : > { %1731 = vrcp.f32 %v1120_v44 }
 0x1fc   : > { %v1730_v63 = vpop.eup %1729 }
 0x1fd   : > { %1138 = vperm.xlu1 %1721, %v1730_v63  }
 0x201   : > { %v1732_v45 = vpop.eup %1731 }
 0x202   : > { %1142 = vperm.xlu1 %1721, %v1732_v45  }
 0x224   : > { %v986_v46 = vpop.f32.mrf.mxu1 }
 0x225   : > { %v987_v47 = vadd.f32 %v986_v46, %v916_v9 }
 0x226   : > { %v1594_v51 = vpop.f32.mrf.mxu1 }
 0x227   : > { %v990_v48 = vmax.f32 %v987_v47, 0.0 }
 0x229   : > { %1608 = vmatmul.mubr.msk.f32.vlgmr.msra.gmra.mxu0 %vm560_vm0, %v990_v48 }
 0x22a   : > { %1637 = vmatprep.mubr.msk.f32.mxu0 %vm560_vm0, %v2094_v4  ;;  %1626 = vmatpush3.msra.mxu0 %v1287_v55  ;;  %v1285_v4 = vld [vmem:[%s2382_s13 + $0x18] sm:$0xff] }
 0x22b   : > { %1627 = vmatprep.subr.mxu0 %v1286_v62 }
 0x22c   : > { %1628 = vmatpush3.msra.mxu0 %v1286_v62 }
 0x22d   : > { %1629 = vmatprep.subr.mxu0 %v1285_v4 }
 0x22e   : > { %1630 = vmatpush3.msra.mxu0 %v1285_v4 }
 0x22f   : > { %1631 = vmatprep.subr.mxu0 %v1284_v0 }
 0x230   : > { %1632 = vmatpush3.msra.mxu0 %v1284_v0 }
 0x231   : > { %1633 = vmatprep.subr.mxu0 %v1283_v29 }
 0x232   : > { %1634 = vmatpush3.msra.mxu0 %v1283_v29 }
 0x233   : > { %1635 = vmatprep.subr.mxu0 %v1282_v6 }
 0x234   : > { %1636 = vmatpush3.msra.mxu0 %v1282_v6 }
 0x235   : > { %1638 = vmatmul.mubr.msk.f32.vlgmr.msra.gmra.mxu0 %vm560_vm0, %v2107_v8  ;;  %v1149_v8 = vsub.s32 %v1146_v21, %v2144_v17 }
 0x278   : > { %v1139_v23 = vpop.permute.xlu1 %1138 }
 0x279   : > { %v1150_v54 = vrot.slane %v1139_v23, %v1149_v8  ;;  %v1157_v60 = vrot.slane %v1139_v23, %v1156_v25 }
 0x27b   : > { %v1176_v24 = vmul.f32 %v1150_v54, %v2224_v49  ;;  %v1177_v10 = vmul.f32 %v1157_v60, %v2226_v59 }
 0x27d   : > { %v1143_v57 = vpop.permute.xlu1 %1142 }
 0x27e   : > { %v1164_v28 = vrot.slane %v1143_v57, %v1149_v8  ;;  %v1171_v30 = vrot.slane %v1143_v57, %v1156_v25 }
 0x280   : > { %v1178_v17 = vmul.f32 %v1164_v28, %v2233_v58  ;;  %v1179_v32 = vmul.f32 %v1171_v30, %v2230_v5 }
 0x2e9   : > { %v1067_v34 = vpop.f32.mrf.mxu0 }
 0x2ea   : > { %v1068_v38 = vadd.f32 %v1067_v34, %v997_v12 }
 0x2eb   : > { %v1609_v11 = vpop.f32.mrf.mxu0 }
 0x2ec   : > { %v1509_v13 = vmul.f32 -1.442695, %v1068_v38 }
 0x2ee   : > { %1733 = vpow2.f32 %v1509_v13 }
 0x2fb   : > { %v1734_v14 = vpop.eup %1733 }
 0x2fc   : > { %v1074_v15 = vadd.f32 1.0, %v1734_v14 }
 0x2fe   : > { %1735 = vrcp.f32 %v1074_v15 }
 0x30b   : > { %v1736_v27 = vpop.eup %1735 }
 0x30c   : > { %v1128_v53 = vrot.slane %v1736_v27, %v2151_v26 }
 0x30e   : > { %v1130_v61 = vcombine.high %v1128_v53, %v1128_v53  ;;  %v1132_v31 = vmul.f32 %v1128_v53, %v2224_v49  ;;  %v1134_v3 = vmul.f32 %v1128_v53, %v2233_v58  ;;  %v1639_v49 = vpop.f32.mrf.mxu0  ;;  %v1517_v58 = vld [vmem:[%s2383_s14] ss:$0 sm:$0xff] }
 0x310   : > { %v1133_v33 = vmul.f32 %v1130_v61, %v2226_v59  ;;  %v1135_v36 = vmul.f32 %v1130_v61, %v2230_v5  ;;  %v1180_v37 = vadd.f32 %v1176_v24, %v1132_v31  ;;  %v1182_v39 = vadd.f32 %v1178_v17, %v1134_v3  ;;  %v1514_v59 = vld [vmem:[%s2381_s12] ss:$0 sm:$0xff]  ;;  %v1361_v43 = vpop.f32.mrf.mxu0 }
 0x311   : > { %v1367_v5 = vadd.f32 %v1639_v49, %v1517_v58  ;;  %v1362_v9 = vadd.f32 %v1517_v58, %v1361_v43 }
 0x312   : > { %v1181_v26 = vadd.f32 %v1177_v10, %v1133_v33  ;;  %v1183_v40 = vadd.f32 %v1179_v32, %v1135_v36 }
 0x314   : > { %v1201_v52 = vcombine.low %v1180_v37, %v1181_v26  ;;  %v1202_v41 = vcombine.low %v1182_v39, %v1183_v40 }
 0x316   : > { %1622 = vmatprep.mubr.msk.f32.mxu1 %vm560_vm0, %v1201_v52 }
 0x317   : > { %1623 = vmatmul.mubr.msk.f32.vlgmr.msra.gmra.mxu1 %vm560_vm0, %v1202_v41 }
 0x3d7   : > { %v1624_v42 = vpop.f32.mrf.mxu1 }
 0x3d8   : > { %v1279_v44 = vadd.f32 %v1624_v42, %v1514_v59 }
 0x3d9   : > { %v1273_v63 = vpop.f32.mrf.mxu1 }
 0x3da   : > { %v1371_v45 = vadd.f32 %v1367_v5, %v1279_v44  ;;  %v1274_v46 = vadd.f32 %v1514_v59, %v1273_v63 }
 0x3dc   : > { %v1375_v47 = vcombine.high %v1371_v45, %v1371_v45  ;;  %1381 = vst.msk [vmem:[%s531_s19 + $0x8] sm:$0xf] %vm1378_vm4, %v1371_v45  ;;  %v1370_v51 = vadd.f32 %v1362_v9, %v1274_v46 }
 0x3de   : > { %1382 = vst.msk [vmem:[%s531_s19 + $0xc] sm:$0xf] %vm1378_vm4, %v1375_v47  ;;  %v1374_v48 = vcombine.high %v1370_v51, %v1370_v51  ;;  %1379 = vst.msk [vmem:[%s531_s19] sm:$0xf] %vm1378_vm4, %v1370_v51 }
 0x3e0   : > { %1380 = vst.msk [vmem:[%s531_s19 + $0x4] sm:$0xf] %vm1378_vm4, %v1374_v48 }
 0x3e1   : > { %1828 = shalt.err (!%p1825_p11)
}
 0x3e2   : > { %s1829_s17 = scalar_lea.hbm %s2326_s22, 256  ;;  %s1833_s19 = scalar_lea.hbm %s2384_s15, 512 }
 0x3e3   : > { %p1830_p0 = scmp.ne.s32.totalorder %s2326_s22, %s1829_s17  ;;  %p1834_p3 = scmp.lt.s32.totalorder %s2326_s22, %s2384_s15 }
 0x3e4   : > { %p1835_p2 = scmp.lt.s32.totalorder %s1833_s19, %s1829_s17 }
 0x3e5   : > { %p1831_p1 = pnand %p1830_p0, %p2021_p5 }
 0x3e6   : > { %p1836_p4 = por %p1835_p2, %p1834_p3 }
 0x3e7   : > { %p1832_p13 = pneg %p1831_p1 }
 0x3e9   : > { %p1837_p10 = pnand %p1836_p4, %p1832_p13 }
 0x3eb   : > { %1840 = shalt.err (!%p1837_p10)
}
 0x3ec   : > { %s1898_s27 = smov 64   ;;  %s1899_s28 = smov 4  }
 0x3ed   : > { %1652 = dma.vmem_to_hbm [thread:$0]  (%p2021_p5), %s2319_s16, 256, %s2326_s22, %s2329_s10, %s1898_s27, %s1898_s27, %s1899_s28  }
 0x3ee PF: > { %s2406_s18 = sld [smem:[#allocation16_spill]] }
 0x3ef   : > { %s2407_s25 = sld [smem:[#allocation14_spill]] }
 0x3f0   : > { %s2408_s20 = sld [smem:[#allocation19_spill]] }
 0x3f4   : > { %p1674_p12 = scmp.ge.s32.totalorder %s2406_s18, 2 }
 0x3f5   : > { %s1412_s23 = sand.u32 1, %s2407_s25  }
 0x3f6   : > { %p2409_p7 = scmp.ne.s32.totalorder %s2408_s20, 0  ;;  %s1413_s17 = scalar_lea.sflag [#allocation6], %s1412_s23 }
 0x3f8   : > { %p1665_p6 = pnand %p1674_p12, %p2409_p7 }
 0x3fa   : > { %p1666_p9 = pneg %p1665_p6 }
 0x3fc   : > { %1866 = dma.done.wait (%p1666_p9), %s1413_s17, 256  }
 0x3fd   : > { %1868 = vsyncadd (%p1666_p9), %s1413_s17, 4294967040  ;;  %s2410_s23 = sld [smem:[#allocation17_spill]]  ;;  %s2413_s20 = smov %s1875_s21 }
 0x3fe   : > { %s2411_s30 = sld [smem:[#allocation15_spill]] }
 0x3ff   : > { %s2412_s22 = sld [smem:[#allocation18_spill]] }
 0x403   : > { %p29_p8 = scmp.ge.s32.totalorder %s2410_s23, 4  }
 0x404   : > { %s2414_s21 = smov %s2411_s30 }
 0x405   :  { %31 = sbr.rel (!%p29_p8) target bundleno = 8 (0x8), region = 129 }
 0x40a   :  { %1418 = vsyncpa [#allocation5], 1 }
 0x40b   :  { %1420 = vsyncpa [#allocation5 + $0x1], 1 }
 0x40c   :  { %1421 = vsyncpa [#allocation8], 1 }
 0x40d   :  { %1422 = vsyncpa [#allocation6], 1 }
 0x40e   :  { %1424 = vsyncpa [#allocation6 + $0x1], 1 }

</bundles_post_ra>
